<compile_context>
chip_gen: v7x
topology: tpu7x:2x2x1
jax: 0.10.0
libtpu: 0.0.40
codegen_flags: <defaults>
</compile_context>

<pallas_src>
import functools
import math

import jax
import jax.numpy as jnp
from jax import lax
from jax.experimental import pallas as pl
from jax.experimental.pallas import tpu as pltpu

LANES = 128
SUBLANES = 8
CHUNK_ROWS = 64  # (64,128) f32 working set stays comfortably inside 64 vregs


def _bce_kernel(x_ref, t_ref, loss_acc_ref, corr_acc_ref, *,
                n, grid_r, tile_rows, chunk, need_mask):
    p = pl.program_id(0)          # "parallel" shard
    i = pl.program_id(1)          # "arbitrary" reduction step inside the shard

    @pl.when(i == 0)
    def _():
        loss_acc_ref[...] = jnp.zeros_like(loss_acc_ref)
        corr_acc_ref[...] = jnp.zeros_like(corr_acc_ref)

    num_chunks = tile_rows // chunk

    if need_mask:
        # Flat element index inside one (chunk, 128) slab.  Hoisted out of the
        # chunk loop (JAX does not CSE broadcast/iota).
        row_io = lax.broadcasted_iota(jnp.int32, (chunk, LANES), 0)
        lane_io = lax.broadcasted_iota(jnp.int32, (chunk, LANES), 1)
        flat_io = row_io * LANES + lane_io
        block_base = (p * grid_r + i) * (tile_rows * LANES)   # scalar

    def chunk_partial(k, loss_acc, corr_acc):
        if num_chunks == 1:
            x = x_ref[...].astype(jnp.float32)
            t = t_ref[...].astype(jnp.float32)
        else:
            r = pl.multiple_of(k * chunk, chunk)
            x = x_ref[pl.ds(r, chunk), :].astype(jnp.float32)
            t = t_ref[pl.ds(r, chunk), :].astype(jnp.float32)

        # Numerically stable BCE with logits: max(x,0) - x*t + log1p(exp(-|x|))
        loss = jnp.maximum(x, 0.0) - x * t + jnp.log1p(jnp.exp(-jnp.abs(x)))
        # sigmoid(x) >= 0.5  <=>  x >= 0 ; targets assumed to be exactly {0,1}.
        correct = jnp.where((x >= 0.0) == (t >= 0.5), 1.0, 0.0)

        if need_mask:
            # Zero every element whose global index >= n (tail + OOB garbage).
            # Use where (not multiply): OOB garbage can be NaN/Inf.
            limit = n - (block_base + k * (chunk * LANES))
            valid = flat_io < limit
            loss = jnp.where(valid, loss, 0.0)
            correct = jnp.where(valid, correct, 0.0)

        # Fold the chunk down to an (8,128) per-lane partial with pure VPU adds.
        loss_acc = loss_acc + jnp.sum(loss.reshape(-1, SUBLANES, LANES), axis=0)
        corr_acc = corr_acc + jnp.sum(correct.reshape(-1, SUBLANES, LANES), axis=0)
        return loss_acc, corr_acc

    zero = jnp.zeros((SUBLANES, LANES), jnp.float32)
    if num_chunks == 1:
        loss_p, corr_p = chunk_partial(0, zero, zero)
    else:
        loss_p, corr_p = lax.fori_loop(
            0, num_chunks, lambda k, c: chunk_partial(k, *c), (zero, zero))

    loss_acc_ref[...] += loss_p
    corr_acc_ref[...] += corr_p


def custom_bce_loss(inputs, target, *, n_par=None, tile_rows_max=None):
    """Pallas implementation of CustomBCELoss.forward.

    inputs, target: 1-D arrays of identical length N (logits / {0,1} targets),
    any float dtype (cast to f32 inside the kernel after the load).
    Returns (loss, accuracy) as JAX f32 scalars.
    """
    assert inputs.shape == target.shape and inputs.ndim == 1
    n = int(inputs.shape[0])
    assert n > 0

    # ---- generation-dependent defaults ---------------------------------
    if n_par is None or tile_rows_max is None:
        kind = ""
        try:
            kind = jax.devices()[0].device_kind.lower()
        except Exception:
            pass
        if n_par is None:
            n_par = 2 if "v7" in kind else 1          # 2 TensorCores only on v7x
        if tile_rows_max is None:
            tile_rows_max = 4096 if "v5" in kind else 8192   # v5e: 16 MiB scoped VMEM

    # ---- choose a (n_par, grid_r) x (tile_rows, 128) tiling -------------
    rows = -(-n // LANES)                      # rows of the (rows, 128) view
    if rows < 2 * SUBLANES:
        n_par = 1                              # too little work to shard
    n_par = max(1, min(n_par, rows))

    per_core = -(-rows // n_par)
    if per_core <= CHUNK_ROWS:
        tile_rows = -(-per_core // SUBLANES) * SUBLANES
        chunk = tile_rows                      # single chunk per grid step
    else:
        tile_rows = min(tile_rows_max, -(-per_core // CHUNK_ROWS) * CHUNK_ROWS)
        chunk = CHUNK_ROWS
    grid_r = -(-per_core // tile_rows)

    # ---- lane-pad only the ragged tail (< 128 elements) -----------------
    n_lane_pad = rows * LANES - n
    x, t = inputs, target
    if n_lane_pad:
        x = jnp.pad(x, (0, n_lane_pad))
        t = jnp.pad(t, (0, n_lane_pad))
    x2 = x.reshape(rows, LANES)
    t2 = t.reshape(rows, LANES)

    coverage = n_par * grid_r * tile_rows * LANES
    need_mask = coverage != n                   # any overrun handled in-kernel

    # Clamp edge blocks so no block starts fully past the array (only needed
    # when tile_rows_max capping makes the grid overshoot); duplicated blocks
    # are fully masked out by the in-kernel element-index mask.
    total_blocks = n_par * grid_r
    valid_blocks = -(-rows // tile_rows)
    if total_blocks > valid_blocks:
        def in_map(p, i):
            return (jnp.minimum(p * grid_r + i, valid_blocks - 1), 0)
    else:
        def in_map(p, i):
            return (p * grid_r + i, 0)

    kernel = functools.partial(
        _bce_kernel, n=n, grid_r=grid_r, tile_rows=tile_rows, chunk=chunk,
        need_mask=need_mask)

    loss_part, corr_part = pl.pallas_call(
        kernel,
        out_shape=(
            jax.ShapeDtypeStruct((n_par * SUBLANES, LANES), jnp.float32),
            jax.ShapeDtypeStruct((n_par * SUBLANES, LANES), jnp.float32),
        ),
        grid=(n_par, grid_r),
        in_specs=[
            pl.BlockSpec((tile_rows, LANES), in_map),
            pl.BlockSpec((tile_rows, LANES), in_map),
        ],
        out_specs=(
            pl.BlockSpec((SUBLANES, LANES), lambda p, i: (p, 0)),
            pl.BlockSpec((SUBLANES, LANES), lambda p, i: (p, 0)),
        ),
        compiler_params=pltpu.CompilerParams(
            dimension_semantics=("parallel", "arbitrary")),
    )(x2, t2)

    # Tiny final reduce over (n_par*8, 128) partials stays in plain JAX.
    denom = jnp.float32(n)        # mean over all elements; len(target) == N (1-D)
    loss = jnp.sum(loss_part) / denom
    accuracy = jnp.sum(corr_part) / denom
    return loss, accuracy


def _reference(inputs, target):
    p = jax.nn.sigmoid(inputs)
    loss = jnp.mean(-target * jnp.log(p) - (1.0 - target) * jnp.log(1.0 - p))
    pred = (p >= 0.5).astype(jnp.float32)
    acc = jnp.sum(pred == target) / target.shape[0]
    return loss, acc


if __name__ == "__main__":
    key = jax.random.PRNGKey(0)

    def check(n, dtype=jnp.float32, **kw):
        k1, k2 = jax.random.split(jax.random.fold_in(key, n))
        x = jax.random.normal(k1, (n,), dtype=jnp.float32).astype(dtype)
        t = jax.random.bernoulli(k2, 0.5, (n,)).astype(dtype)
        loss, acc = custom_bce_loss(x, t, **kw)
        loss = jax.block_until_ready(loss)
        acc = jax.block_until_ready(acc)
        rl, ra = _reference(x.astype(jnp.float32), t.astype(jnp.float32))
        assert jnp.allclose(loss, rl, rtol=1e-5, atol=1e-5), (n, loss, rl)
        assert jnp.allclose(acc, ra, rtol=1e-6, atol=1e-6), (n, acc, ra)

    check(4096)                                # lane-divisible: zero-copy wrapper
    check(1000)                                # ragged tail -> in-kernel mask
    check(4096, dtype=jnp.bfloat16)            # half-HBM-traffic input dtype
    check(16640, n_par=2, tile_rows_max=64)    # multi-shard + clamped edge block
    check(16640)                               # multi-chunk fori_loop inside a tile

    print("KERNEL_OK")
</pallas_src>

<mosaic_0001>
module attributes {stable_mosaic.version = 11 : i64} {
  func.func @_bce_kernel(%arg0: i32, %arg1: i32, %arg2: memref<32x128xf32, #tpu.memory_space<vmem>>, %arg3: memref<32x128xf32, #tpu.memory_space<vmem>>, %arg4: memref<8x128xf32, #tpu.memory_space<vmem>>, %arg5: memref<8x128xf32, #tpu.memory_space<vmem>>) attributes {dimension_semantics = [#tpu.dimension_semantics<parallel>, #tpu.dimension_semantics<arbitrary>], iteration_bounds = array<i64: 1, 1>, scalar_prefetch = 0 : i64, scratch_operands = 0 : i64, tpu.core_type = #tpu.core_type<tc>, window_params = [{transform_indices = @transform_0, window_bounds = array<i64: 32, 128>}, {transform_indices = @transform_1, window_bounds = array<i64: 32, 128>}, {transform_indices = @transform_2, window_bounds = array<i64: 8, 128>}, {transform_indices = @transform_3, window_bounds = array<i64: 8, 128>}]} {
    %c0_i32 = arith.constant 0 : i32
    %0 = arith.cmpi eq, %arg1, %c0_i32 : i32
    %1 = arith.extui %0 : i1 to i32
    %c0_i32_0 = arith.constant 0 : i32
    %2 = arith.cmpi ne, %1, %c0_i32_0 : i32
    scf.if %2 {
      %cst_21 = arith.constant 0.000000e+00 : f32
      %37 = vector.broadcast %cst_21 : f32 to vector<8x128xf32>
      %c0_22 = arith.constant 0 : index
      %c0_23 = arith.constant 0 : index
      %38 = vector.load %arg4[%c0_22, %c0_23] : memref<8x128xf32, #tpu.memory_space<vmem>>, vector<8x128xf32>
      tpu.vector_store %arg4[%c0_22, %c0_23], %37 {strides = array<i32>} : memref<8x128xf32, #tpu.memory_space<vmem>>, vector<8x128xf32>,
      %cst_24 = arith.constant 0.000000e+00 : f32
      %39 = vector.broadcast %cst_24 : f32 to vector<8x128xf32>
      %c0_25 = arith.constant 0 : index
      %c0_26 = arith.constant 0 : index
      %40 = vector.load %arg5[%c0_25, %c0_26] : memref<8x128xf32, #tpu.memory_space<vmem>>, vector<8x128xf32>
      tpu.vector_store %arg5[%c0_25, %c0_26], %39 {strides = array<i32>} : memref<8x128xf32, #tpu.memory_space<vmem>>, vector<8x128xf32>,
    } else {
    }
    %cst = arith.constant 0.000000e+00 : f32
    %3 = vector.broadcast %cst : f32 to vector<8x128xf32>
    %c0 = arith.constant 0 : index
    %c0_1 = arith.constant 0 : index
    %4 = vector.load %arg2[%c0, %c0_1] : memref<32x128xf32, #tpu.memory_space<vmem>>, vector<32x128xf32>
    %c0_2 = arith.constant 0 : index
    %c0_3 = arith.constant 0 : index
    %5 = vector.load %arg3[%c0_2, %c0_3] : memref<32x128xf32, #tpu.memory_space<vmem>>, vector<32x128xf32>
    %cst_4 = arith.constant 0.000000e+00 : f32
    %6 = vector.broadcast %cst_4 : f32 to vector<32x128xf32>
    %7 = arith.maximumf %4, %6 : vector<32x128xf32>
    %8 = arith.mulf %4, %5 : vector<32x128xf32>
    %9 = arith.subf %7, %8 : vector<32x128xf32>
    %10 = math.absf %4 : vector<32x128xf32>
    %cst_5 = arith.constant 0.000000e+00 : f32
    %11 = vector.broadcast %cst_5 : f32 to vector<32x128xf32>
    %12 = arith.subf %11, %10 : vector<32x128xf32>
    %13 = math.exp %12 : vector<32x128xf32>
    %14 = math.log1p %13 : vector<32x128xf32>
    %15 = arith.addf %9, %14 : vector<32x128xf32>
    %cst_6 = arith.constant 0.000000e+00 : f32
    %16 = vector.broadcast %cst_6 : f32 to vector<32x128xf32>
    %17 = arith.cmpf oge, %4, %16 : vector<32x128xf32>
    %cst_7 = arith.constant 5.000000e-01 : f32
    %18 = vector.broadcast %cst_7 : f32 to vector<32x128xf32>
    %19 = arith.cmpf oge, %5, %18 : vector<32x128xf32>
    %20 = arith.xori %17, %19 : vector<32x128xi1>
    %cst_8 = arith.constant dense<true> : vector<32x128xi1>
    %21 = arith.xori %20, %cst_8 : vector<32x128xi1>
    %cst_9 = arith.constant 1.000000e+00 : f32
    %cst_10 = arith.constant 0.000000e+00 : f32
    %22 = vector.broadcast %cst_9 : f32 to vector<32x128xf32>
    %23 = vector.broadcast %cst_10 : f32 to vector<32x128xf32>
    %24 = arith.select %21, %22, %23 : vector<32x128xi1>, vector<32x128xf32>
    %25 = vector.shape_cast %15 : vector<32x128xf32> to vector<4x8x128xf32>
    %cst_11 = arith.constant dense<0.000000e+00> : vector<8x128xf32>
    %26 = vector.multi_reduction <add>, %25, %cst_11 [0] : vector<4x8x128xf32> to vector<8x128xf32>
    %27 = arith.addf %3, %26 : vector<8x128xf32>
    %28 = vector.shape_cast %24 : vector<32x128xf32> to vector<4x8x128xf32>
    %cst_12 = arith.constant dense<0.000000e+00> : vector<8x128xf32>
    %29 = vector.multi_reduction <add>, %28, %cst_12 [0] : vector<4x8x128xf32> to vector<8x128xf32>
    %30 = arith.addf %3, %29 : vector<8x128xf32>
    %c0_13 = arith.constant 0 : index
    %c0_14 = arith.constant 0 : index
    %31 = vector.load %arg4[%c0_13, %c0_14] : memref<8x128xf32, #tpu.memory_space<vmem>>, vector<8x128xf32>
    %32 = arith.addf %31, %27 : vector<8x128xf32>
    %c0_15 = arith.constant 0 : index
    %c0_16 = arith.constant 0 : index
    %33 = vector.load %arg4[%c0_15, %c0_16] : memref<8x128xf32, #tpu.memory_space<vmem>>, vector<8x128xf32>
    tpu.vector_store %arg4[%c0_15, %c0_16], %32 {strides = array<i32>} : memref<8x128xf32, #tpu.memory_space<vmem>>, vector<8x128xf32>,
    %c0_17 = arith.constant 0 : index
    %c0_18 = arith.constant 0 : index
    %34 = vector.load %arg5[%c0_17, %c0_18] : memref<8x128xf32, #tpu.memory_space<vmem>>, vector<8x128xf32>
    %35 = arith.addf %34, %30 : vector<8x128xf32>
    %c0_19 = arith.constant 0 : index
    %c0_20 = arith.constant 0 : index
    %36 = vector.load %arg5[%c0_19, %c0_20] : memref<8x128xf32, #tpu.memory_space<vmem>>, vector<8x128xf32>
    tpu.vector_store %arg5[%c0_19, %c0_20], %35 {strides = array<i32>} : memref<8x128xf32, #tpu.memory_space<vmem>>, vector<8x128xf32>,
    return
  }
  func.func @transform_0(%arg0: i32, %arg1: i32) -> (i32, i32) {
    %c1_i32 = arith.constant 1 : i32
    %0 = arith.muli %arg0, %c1_i32 : i32
    %1 = arith.addi %0, %arg1 : i32
    %c0_i32 = arith.constant 0 : i32
    %c0_i32_0 = arith.constant 0 : i32
    return %1, %c0_i32 : i32, i32
  }
  func.func @transform_1(%arg0: i32, %arg1: i32) -> (i32, i32) {
    %c1_i32 = arith.constant 1 : i32
    %0 = arith.muli %arg0, %c1_i32 : i32
    %1 = arith.addi %0, %arg1 : i32
    %c0_i32 = arith.constant 0 : i32
    %c0_i32_0 = arith.constant 0 : i32
    return %1, %c0_i32 : i32, i32
  }
  func.func @transform_2(%arg0: i32, %arg1: i32) -> (i32, i32) {
    %c0_i32 = arith.constant 0 : i32
    %c0_i32_0 = arith.constant 0 : i32
    return %arg0, %c0_i32 : i32, i32
  }
  func.func @transform_3(%arg0: i32, %arg1: i32) -> (i32, i32) {
    %c0_i32 = arith.constant 0 : i32
    %c0_i32_0 = arith.constant 0 : i32
    return %arg0, %c0_i32 : i32, i32
  }
}

</mosaic_0001>

<bundles_post_ra>
// kernel: tpu_custom_call.1
= control target key start
LH: loop header
LB: loop body
LE: loop exit
PB: predicated region body
PF: predicated region fallthrough
CT: control target
= control target key end

     0   :  { %9 = vsyncpa [#allocation3], 0  ;;  %s455_s0 = inlined_call_operand.hbm [shape: f32[32,128], index: 0, kind: input, shape index: {}]   ;;  %s456_s1 = inlined_call_operand.hbm [shape: f32[32,128], index: 1, kind: input, shape index: {}]   ;;  %s457_s2 = inlined_call_operand.hbm [shape: f32[8,128], index: 2, kind: output, shape index: {0}]   ;;  %s458_s3 = inlined_call_operand.hbm [shape: f32[8,128], index: 3, kind: output, shape index: {1}]  }
   0x1   :  { %10 = vsyncpa [#allocation6], 0 }
   0x2   :  { %11 = vsyncpa [#allocation4], 0 }
   0x3   :  { %12 = vsyncpa [#allocation9], 0  ;;  %s321_s12 = smov [#allocation2]   ;;  %s225_s16 = scalar_lea.hbm %s455_s0, 512 }
   0x4   :  { %s22_s13 = sshll.u32 %s321_s12, 4  ;;  %p226_p0 = scmp.ne.s32.totalorder %s455_s0, %s225_s16  ;;  %s23_s13 = int_to_ptr.vmem [resolvable:$true] %s22_s13 }
   0x5   :  { %p229_p1 = scmp.lt.u32.totalorder %s225_s16, %s455_s0 }
   0x7   :  { %p231_p2 = pnand %p229_p1, %p226_p0 }
   0x9   :  { %234 = shalt.err (!%p231_p2)
}
   0xa   :  { %s235_s21 = scalar_lea.vmem %s23_s13, 512  ;;  %p240_p4 = scmp.lt.s32.totalorder %s23_s13, %s23_s13 }
   0xb   :  { %p236_p3 = scmp.ne.s32.totalorder %s23_s13, %s235_s21  ;;  %p241_p5 = scmp.lt.s32.totalorder %s235_s21, %s235_s21 }
   0xd   :  { %p242_p6 = por %p241_p5, %p240_p4 }
   0xf   :  { %p243_p7 = pnand %p242_p6, %p236_p3 }
  0x11   :  { %246 = shalt.err (!%p243_p7)
}
  0x12   :  { %s322_s22 = smov 128   ;;  %s323_s23 = smov 8  }
  0x13   :  { %28 = dma.hbm_to_vmem [thread:$0]  %s455_s0, 512, %s23_s13, [#allocation3], %s322_s22, %s322_s22, %s323_s23  }
  0x14   :  { %s324_s26 = smov [#allocation5]   ;;  %s247_s30 = scalar_lea.hbm %s456_s1, 512 }
  0x15   :  { %s38_s27 = sshll.u32 %s324_s26, 4  ;;  %p248_p8 = scmp.ne.s32.totalorder %s456_s1, %s247_s30  ;;  %s39_s27 = int_to_ptr.vmem [resolvable:$true] %s38_s27 }
  0x16   :  { %p251_p9 = scmp.lt.u32.totalorder %s247_s30, %s456_s1 }
  0x18   :  { %p253_p10 = pnand %p251_p9, %p248_p8 }
  0x1a   :  { %256 = shalt.err (!%p253_p10)
}
  0x1b   :  { %s257_s8 = scalar_lea.vmem %s39_s27, 512  ;;  %p262_p12 = scmp.lt.s32.totalorder %s39_s27, %s39_s27 }
  0x1c   :  { %p258_p11 = scmp.ne.s32.totalorder %s39_s27, %s257_s8  ;;  %p263_p13 = scmp.lt.s32.totalorder %s257_s8, %s257_s8 }
  0x1e   :  { %p264_p0 = por %p263_p13, %p262_p12 }
  0x20   :  { %p265_p1 = pnand %p264_p0, %p258_p11 }
  0x22   :  { %268 = shalt.err (!%p265_p1)
}
  0x23   :  { %44 = dma.hbm_to_vmem [thread:$0]  %s456_s1, 512, %s39_s27, [#allocation6], %s322_s22, %s322_s22, %s323_s23  }
  0x24   :  { %313 = dma.done.wait [#allocation3], 512  }
  0x25   :  { %314 = vsyncadd [#allocation3], 4294966784 }
  0x26   :  { %315 = dma.done.wait [#allocation6], 512  }
  0x27   :  { %316 = vsyncadd [#allocation6], 4294966784  ;;  %v373_v0 = vld [vmem:[#allocation2] sm:$0xff]  ;;  %v375_v1 = vld [vmem:[#allocation2 + $0x8] sm:$0xff]  ;;  %vm325_vm12 = vmmov 1   ;;  %v326_v20 = vmov 0.0  }
  0x28   :  { %v377_v2 = vld [vmem:[#allocation2 + $0x10] sm:$0xff]  ;;  %v379_v3 = vld [vmem:[#allocation2 + $0x18] sm:$0xff]  ;;  %v81_v4 = vand.u32 2147483647, %v373_v0  ;;  %v82_v5 = vand.u32 2147483647, %v375_v1 }
  0x29   :  { %v83_v6 = vand.u32 2147483647, %v377_v2  ;;  %v84_v7 = vand.u32 2147483647, %v379_v3  ;;  %v65_v11 = vld [vmem:[#allocation5] sm:$0xff]  ;;  %v385_v12 = vld [vmem:[#allocation5 + $0x8] sm:$0xff] }
  0x2a   :  { %v85_v8 = vsub.f32 0.0, %v81_v4  ;;  %v86_v9 = vsub.f32 0.0, %v82_v5  ;;  %vm137_vm0 = vcmp.ge.f32.partialorder %v373_v0, 0.0  ;;  %vm138_vm1 = vcmp.ge.f32.partialorder %v375_v1, 0.0  ;;  %v390_v17 = vld [vmem:[#allocation5 + $0x10] sm:$0xff]  ;;  %v392_v18 = vld [vmem:[#allocation5 + $0x18] sm:$0xff] }
  0x2b   :  { %v87_v10 = vsub.f32 0.0, %v83_v6  ;;  %v88_v13 = vsub.f32 0.0, %v84_v7  ;;  %vm139_vm2 = vcmp.ge.f32.partialorder %v377_v2, 0.0  ;;  %vm141_vm3 = vcmp.ge.f32.partialorder %v65_v11, 0.5  ;;  %s327_s1 = smov [#allocation8]  }
  0x2c   :  { %v89_v14 = vmul.f32 1.442695, %v85_v8  ;;  %v91_v15 = vmul.f32 1.442695, %v86_v9  ;;  %vm142_vm4 = vcmp.ge.f32.partialorder %v385_v12, 0.5  ;;  %vm140_vm5 = vcmp.ge.f32.partialorder %v379_v3, 0.0  ;;  %vm145_vm8 = vmxor %vm137_vm0, %vm141_vm3 }
  0x2d   :  { %v93_v16 = vmul.f32 1.442695, %v87_v10  ;;  %v95_v19 = vmul.f32 1.442695, %v88_v13  ;;  %vm143_vm6 = vcmp.ge.f32.partialorder %v390_v17, 0.5  ;;  %vm144_vm7 = vcmp.ge.f32.partialorder %v392_v18, 0.5  ;;  %vm146_vm9 = vmxor %vm138_vm1, %vm142_vm4 }
  0x2e   :  { %209 = vpow2.f32 %v89_v14  ;;  %vm147_vm10 = vmxor %vm139_vm2, %vm143_vm6  ;;  %s187_s10 = sshll.u32 %s327_s1, 4  ;;  %v69_v41 = vmax.f32 %v373_v0, 0.0  ;;  %v73_v42 = vmul.f32 %v65_v11, %v373_v0  ;;  %v70_v45 = vmax.f32 %v375_v1, 0.0  ;;  %s188_s10 = int_to_ptr.vmem [resolvable:$true] %s187_s10 }
  0x2f   :  { %211 = vpow2.f32 %v91_v15  ;;  %vm148_vm11 = vmxor %vm140_vm5, %vm144_vm7  ;;  %v74_v46 = vmul.f32 %v385_v12, %v375_v1  ;;  %s269_s11 = scalar_lea.vmem %s188_s10, 128  ;;  %p274_p3 = scmp.lt.s32.totalorder %s188_s10, %s188_s10 }
  0x30   :  { %213 = vpow2.f32 %v93_v16  ;;  %vm149_vm13 = vmxor %vm145_vm8, %vm325_vm12  ;;  %p270_p2 = scmp.ne.s32.totalorder %s188_s10, %s269_s11  ;;  %p275_p4 = scmp.lt.s32.totalorder %s269_s11, %s269_s11 }
  0x31   :  { %215 = vpow2.f32 %v95_v19  ;;  %vm150_vm14 = vmxor %vm146_vm9, %vm325_vm12  ;;  %v153_v21 = vsel %vm149_vm13, 1.0, %v326_v20 }
  0x32   :  { %vm151_vm15 = vmxor %vm147_vm10, %vm325_vm12  ;;  %v154_v22 = vsel %vm150_vm14, 1.0, %v326_v20  ;;  %p276_p5 = por %p275_p4, %p274_p3 }
  0x33   :  { %vm152_vm0 = vmxor %vm148_vm11, %vm325_vm12  ;;  %v155_v23 = vsel %vm151_vm15, 1.0, %v326_v20  ;;  %v161_v24 = vadd.f32 %v154_v22, %v153_v21 }
  0x34   :  { %v156_v26 = vsel %vm152_vm0, 1.0, %v326_v20  ;;  %p277_p6 = pnand %p276_p5, %p270_p2 }
  0x35   :  { %v162_v27 = vadd.f32 %v161_v24, %v155_v23 }
  0x37   :  { %v163_v34 = vadd.f32 %v162_v27, %v156_v26 }
  0x38   :  { %v210_v25 = vpop.eup %209 }
  0x39   :  { %v212_v28 = vpop.eup %211  ;;  %v97_v29 = vadd.f32 1.0, %v210_v25  ;;  %v100_v35 = vmul.f32 -0.5, %v210_v25  ;;  %v103_v43 = vand.u32 2147483647, %v210_v25  ;;  %170 = vst [vmem:[#allocation8] sm:$0xff] %v163_v34 }
  0x3a   :  { %v214_v30 = vpop.eup %213  ;;  %v106_v31 = vadd.f32 1.0, %v212_v28  ;;  %v109_v36 = vmul.f32 -0.5, %v212_v28  ;;  %v112_v47 = vand.u32 2147483647, %v212_v28 }
  0x3b   :  { %v402_v32 = vpop.eup %215  ;;  %217 = vlog2.f32 %v97_v29  ;;  %v115_v33 = vadd.f32 1.0, %v214_v30  ;;  %v118_v38 = vmul.f32 -0.5, %v214_v30  ;;  %v101_v39 = vadd.f32 1.0, %v100_v35 }
  0x3c   :  { %219 = vlog2.f32 %v106_v31  ;;  %v124_v37 = vadd.f32 1.0, %v402_v32  ;;  %v127_v40 = vmul.f32 -0.5, %v402_v32  ;;  %v110_v44 = vadd.f32 1.0, %v109_v36 }
  0x3d   :  { %221 = vlog2.f32 %v115_v33  ;;  %v119_v48 = vadd.f32 1.0, %v118_v38 }
  0x3e   :  { %223 = vlog2.f32 %v124_v37 }
  0x3f   :  { %280 = shalt.err (!%p277_p6)
}
  0x40   :  { %s281_s14 = scalar_lea.hbm %s458_s3, 128 }
  0x41   :  { %p282_p7 = scmp.ne.s32.totalorder %s458_s3, %s281_s14  ;;  %p285_p8 = scmp.lt.u32.totalorder %s281_s14, %s458_s3 }
  0x43   :  { %p287_p9 = pnand %p285_p8, %p282_p7 }
  0x45   :  { %290 = shalt.err (!%p287_p9)
}
  0x46   :  { %190 = dma.vmem_to_hbm [thread:$0]  %s188_s10, 128, %s458_s3, [#allocation9]   ;;  %v71_v49 = vmax.f32 %v377_v2, 0.0  ;;  %v75_v50 = vmul.f32 %v390_v17, %v377_v2  ;;  %v121_v51 = vand.u32 2147483647, %v214_v30  ;;  %v72_v52 = vmax.f32 %v379_v3, 0.0  ;;  %v218_v56 = vpop.eup %217 }
  0x47   :  { %v76_v53 = vmul.f32 %v392_v18, %v379_v3  ;;  %v102_v54 = vmul.f32 %v210_v25, %v101_v39  ;;  %v128_v55 = vadd.f32 1.0, %v127_v40  ;;  %v77_v57 = vsub.f32 %v69_v41, %v73_v42  ;;  %v220_v61 = vpop.eup %219  ;;  %s328_s3 = smov [#allocation7]  }
  0x48   :  { %vm429_vm1 = vcmp.lt.f32.partialorder %v103_v43, 0.0004427343  ;;  %v111_v59 = vmul.f32 %v212_v28, %v110_v44  ;;  %v130_v60 = vand.u32 2147483647, %v402_v32  ;;  %v78_v62 = vsub.f32 %v70_v45, %v74_v46  ;;  %v222_v2 = vpop.eup %221  ;;  %s177_s21 = sshll.u32 %s328_s3, 4  ;;  %s178_s21 = int_to_ptr.vmem [resolvable:$true] %s177_s21 }
  0x49   :  { %v99_v63 = vmul.f32 0.6931472, %v218_v56  ;;  %vm434_vm2 = vcmp.lt.f32.partialorder %v112_v47, 0.0004427343  ;;  %v120_v1 = vmul.f32 %v214_v30, %v119_v48  ;;  %v79_v3 = vsub.f32 %v71_v49, %v75_v50  ;;  %v224_v8 = vpop.eup %223  ;;  %s291_s22 = scalar_lea.vmem %s178_s21, 128  ;;  %p296_p11 = scmp.lt.s32.totalorder %s178_s21, %s178_s21 }
  0x4a   :  { %v108_v4 = vmul.f32 0.6931472, %v220_v61  ;;  %vm122_vm3 = vcmp.lt.f32.partialorder %v121_v51, 0.0004427343  ;;  %v117_v6 = vmul.f32 0.6931472, %v222_v2  ;;  %v129_v7 = vmul.f32 %v402_v32, %v128_v55  ;;  %p292_p10 = scmp.ne.s32.totalorder %s178_s21, %s291_s22  ;;  %p297_p12 = scmp.lt.s32.totalorder %s291_s22, %s291_s22 }
  0x4b   :  { %v105_v5 = vsel %vm429_vm1, %v102_v54, %v99_v63  ;;  %v80_v9 = vsub.f32 %v72_v52, %v76_v53  ;;  %vm131_vm4 = vcmp.lt.f32.partialorder %v130_v60, 0.0004427343  ;;  %v126_v13 = vmul.f32 0.6931472, %v224_v8 }
  0x4c   :  { %v114_v10 = vsel %vm434_vm2, %v111_v59, %v108_v4  ;;  %v133_v11 = vadd.f32 %v105_v5, %v77_v57  ;;  %v123_v12 = vsel %vm122_vm3, %v120_v1, %v117_v6  ;;  %p298_p13 = por %p297_p12, %p296_p11 }
  0x4d   :  { %v134_v14 = vadd.f32 %v114_v10, %v78_v62  ;;  %v135_v15 = vadd.f32 %v123_v12, %v79_v3  ;;  %v132_v16 = vsel %vm131_vm4, %v129_v7, %v126_v13 }
  0x4e   :  { %v136_v18 = vadd.f32 %v132_v16, %v80_v9  ;;  %p299_p0 = pnand %p298_p13, %p292_p10 }
  0x4f   :  { %v157_v17 = vadd.f32 %v134_v14, %v133_v11 }
  0x51   :  { %v158_v19 = vadd.f32 %v157_v17, %v135_v15 }
  0x53   :  { %v159_v20 = vadd.f32 %v158_v19, %v136_v18 }
  0x55   :  { %167 = vst [vmem:[#allocation7] sm:$0xff] %v159_v20 }
  0x56   :  { %302 = shalt.err (!%p299_p0)
}
  0x57   :  { %s303_s25 = scalar_lea.hbm %s457_s2, 128 }
  0x58   :  { %p304_p1 = scmp.ne.s32.totalorder %s457_s2, %s303_s25  ;;  %p307_p2 = scmp.lt.u32.totalorder %s303_s25, %s457_s2 }
  0x5a   :  { %p309_p3 = pnand %p307_p2, %p304_p1 }
  0x5c   :  { %312 = shalt.err (!%p309_p3)
}
  0x5d   :  { %180 = dma.vmem_to_hbm [thread:$0]  %s178_s21, 128, %s457_s2, [#allocation4]  }
  0x5e   :  { %317 = dma.done.wait [#allocation4], 128  }
  0x5f   :  { %318 = vsyncadd [#allocation4], 4294967168 }
  0x60   :  { %319 = dma.done.wait [#allocation9], 128  }
  0x61   :  { %320 = vsyncadd [#allocation9], 4294967168 }
  0x62   :  { %197 = vsyncpa [#allocation3], 1 }
  0x63   :  { %198 = vsyncpa [#allocation6], 1 }
  0x64   :  { %199 = vsyncpa [#allocation4], 1 }
  0x65   :  { %200 = vsyncpa [#allocation9], 1 }

</bundles_post_ra>
